<compile_context>
chip_gen: v7x
topology: tpu7x:2x2x1
jax: 0.10.0
libtpu: 0.0.40
codegen_flags: <defaults>
</compile_context>

<pallas_src>
import math
from functools import partial

import jax
import jax.numpy as jnp
from jax.experimental import pallas as pl
from jax.experimental.pallas import tpu as pltpu


# ----------------------------------------------------------------------------
# VMEM budget (generation aware)
# ----------------------------------------------------------------------------
def _vmem_budget_bytes():
    cap = 64 << 20  # conservative fallback (v7x physical VMEM per TC)
    try:
        cap = int(pltpu.get_tpu_info().vmem_capacity_bytes)
    except Exception:
        pass
    # Use roughly half of physical VMEM as our working budget:
    # ~32 MiB on v7x (64 MiB phys), ~64 MiB on v5e/v6e (128 MiB phys).
    return max(16 << 20, cap // 2)


def _pick_hw_tile(hw, c, itemsize, per_block_budget):
    """Largest lane tile (multiple of 128) whose (C, t_hw) block fits the
    per-block budget.  Prefers a divisor of HW (no masked tail) if one exists
    within 2x of the maximum tile; otherwise returns a 128-multiple tile and
    the caller uses a cdiv grid with a masked tail."""
    max_t = per_block_budget // max(1, c * itemsize)
    if hw <= max_t:
        return hw                                   # single full-extent block
    t = (min(hw, max_t) // 128) * 128
    if t < 128:
        return 128
    for cand in range(t, max(127, t // 2 - 1), -128):
        if hw % cand == 0:
            return cand
    return t


# ----------------------------------------------------------------------------
# Fused single-pass kernel: pool + MLP + sigmoid + multiply (x stays in VMEM)
# ----------------------------------------------------------------------------
def _fused_kernel(x_ref, w1t_ref, w2_ref, o_ref, *, inv_hw):
    # x_ref: (1, C, HW)   w1t_ref: (C, hidden)   w2_ref: (C, hidden)   o_ref: (1, C, HW)
    x = x_ref[...]
    xf = x.astype(jnp.float32)
    avg = jnp.sum(xf, axis=-1, keepdims=True) * inv_hw        # (1, C, 1)
    mx = jnp.max(xf, axis=-1, keepdims=True)                  # (1, C, 1)

    w1t = w1t_ref[...].astype(jnp.float32)                    # (C, hidden)
    w2 = w2_ref[...].astype(jnp.float32)                      # (C, hidden)

    # Shared MLP on the VPU/XLU (hidden = C // ratio is tiny; skip the MXU):
    #   h = relu(W1 @ avg) + relu(W1 @ max)   -> (1, 1, hidden)
    #   a = W2 @ h                            -> (1, C, 1)
    h = (jnp.maximum(jnp.sum(w1t * avg, axis=1, keepdims=True), 0.0)
         + jnp.maximum(jnp.sum(w1t * mx, axis=1, keepdims=True), 0.0))
    a = jnp.sum(w2 * h, axis=-1, keepdims=True)               # (1, C, 1)
    scale = jax.nn.sigmoid(a)

    o_ref[...] = (x * scale.astype(x.dtype)).astype(o_ref.dtype)


# ----------------------------------------------------------------------------
# Tiled path, kernel A: streamed avg/max pooling (f32 accumulation in the
# resident output blocks; masked tail for non-128-multiple HW)
# ----------------------------------------------------------------------------
def _pool_kernel(x_ref, sum_ref, max_ref, *, hw_total, t_hw, needs_mask):
    j = pl.program_id(1)
    x = x_ref[...].astype(jnp.float32)                         # (1, C, t_hw)

    if needs_mask:
        lane = jax.lax.broadcasted_iota(jnp.int32, x.shape, 2)
        valid = lane < (hw_total - j * t_hw)
        x_sum = jnp.where(valid, x, 0.0)
        x_max = jnp.where(valid, x, -jnp.inf)
    else:
        x_sum = x
        x_max = x

    tile_sum = jnp.sum(x_sum, axis=-1, keepdims=True)          # (1, C, 1)
    tile_max = jnp.max(x_max, axis=-1, keepdims=True)          # (1, C, 1)

    @pl.when(j == 0)
    def _init():
        sum_ref[...] = tile_sum
        max_ref[...] = tile_max

    @pl.when(j > 0)
    def _accumulate():
        sum_ref[...] = sum_ref[...] + tile_sum
        max_ref[...] = jnp.maximum(max_ref[...], tile_max)


# ----------------------------------------------------------------------------
# Tiled path, kernel B: out = x * scale (lane-dense, same-dtype multiply)
# ----------------------------------------------------------------------------
def _scale_kernel(x_ref, scale_ref, o_ref):
    # x_ref: (1, C, t_hw), scale_ref: (1, C, 1), o_ref: (1, C, t_hw)
    o_ref[...] = (x_ref[...] * scale_ref[...].astype(x_ref.dtype)).astype(o_ref.dtype)


# ----------------------------------------------------------------------------
# Wrapper
# ----------------------------------------------------------------------------
def channel_attention_forward(x, w1, w2, *, force_path=None, hw_tile_override=None):
    """ChannelAttention forward.

    x:  (B, C, H, W) NCHW input.
    w1: (C // ratio, C)   first 1x1 conv weight (torch (out, in) layout).
    w2: (C, C // ratio)   second 1x1 conv weight.
    force_path / hw_tile_override: testing knobs ("fused" | "tiled" | None).
    Returns sigmoid(fc(avg_pool(x)) + fc(max_pool(x))) * x, shape (B, C, H, W).
    """
    B, C, H, W = x.shape
    hidden = w1.shape[0]
    assert w1.shape == (hidden, C) and w2.shape == (C, hidden)

    HW = H * W
    x3 = x.reshape(B, C, HW)                 # free collapse of trailing dims
    itemsize = x.dtype.itemsize
    budget = _vmem_budget_bytes()

    # ---- fused-path fit check: 2x double-buffered input + 2x output blocks
    slab_bytes = C * HW * itemsize
    fused_need = 4 * slab_bytes + 4 * C * max(1, hidden) * 4 + (1 << 20)
    use_fused = fused_need <= budget
    if force_path == "fused":
        use_fused = True
    elif force_path == "tiled":
        use_fused = False

    if use_fused:
        w1t = jnp.transpose(w1)              # (C, hidden); tiny, once at trace time
        out3 = pl.pallas_call(
            partial(_fused_kernel, inv_hw=1.0 / float(HW)),
            out_shape=jax.ShapeDtypeStruct((B, C, HW), x.dtype),
            grid_spec=pltpu.PrefetchScalarGridSpec(
                num_scalar_prefetch=0,
                grid=(B,),
                in_specs=[
                    pl.BlockSpec((1, C, HW), lambda b: (b, 0, 0)),
                    pl.BlockSpec((C, hidden), lambda b: (0, 0)),
                    pl.BlockSpec((C, hidden), lambda b: (0, 0)),
                ],
                out_specs=pl.BlockSpec((1, C, HW), lambda b: (b, 0, 0)),
            ),
            compiler_params=pltpu.CompilerParams(
                dimension_semantics=("parallel",),
                vmem_limit_bytes=int(budget)),
        )(x3, w1t, w2)
        return out3.reshape(B, C, H, W)

    # ------------------------------- tiled path -----------------------------
    # Kernel A streams only x (outputs are tiny) -> bigger tile than kernel B.
    if hw_tile_override is not None:
        t_pool = t_sc = int(hw_tile_override)
    else:
        t_pool = _pick_hw_tile(HW, C, itemsize, int(budget * 0.45))
        t_sc = _pick_hw_tile(HW, C, itemsize, int(budget * 0.22))

    n_pool = pl.cdiv(HW, t_pool)
    needs_mask = (HW % t_pool) != 0

    pooled_sum, pooled_max = pl.pallas_call(
        partial(_pool_kernel, hw_total=HW, t_hw=t_pool, needs_mask=needs_mask),
        out_shape=(jax.ShapeDtypeStruct((B, C, 1), jnp.float32),
                   jax.ShapeDtypeStruct((B, C, 1), jnp.float32)),
        grid_spec=pltpu.PrefetchScalarGridSpec(
            num_scalar_prefetch=0,
            grid=(B, n_pool),
            in_specs=[pl.BlockSpec((1, C, t_pool), lambda b, j: (b, 0, j))],
            out_specs=[pl.BlockSpec((1, C, 1), lambda b, j: (b, 0, 0)),
                       pl.BlockSpec((1, C, 1), lambda b, j: (b, 0, 0))],
        ),
        compiler_params=pltpu.CompilerParams(
            dimension_semantics=("parallel", "arbitrary"),
            vmem_limit_bytes=int(budget)),
    )(x3)

    # Tiny shared MLP + sigmoid in plain XLA (B x C elements; negligible).
    avg = pooled_sum[:, :, 0] * (1.0 / float(HW))          # (B, C)
    mx = pooled_max[:, :, 0]                               # (B, C)
    w1f = w1.astype(jnp.float32)
    w2f = w2.astype(jnp.float32)

    def fc(v):
        return jnp.maximum(v @ w1f.T, 0.0) @ w2f.T         # (B, C)

    scale = jax.nn.sigmoid(fc(avg) + fc(mx)).astype(x.dtype)
    scale3 = scale[:, :, None]                             # (B, C, 1)

    n_sc = pl.cdiv(HW, t_sc)
    out3 = pl.pallas_call(
        _scale_kernel,
        out_shape=jax.ShapeDtypeStruct((B, C, HW), x.dtype),
        grid_spec=pltpu.PrefetchScalarGridSpec(
            num_scalar_prefetch=0,
            grid=(B, n_sc),
            in_specs=[
                pl.BlockSpec((1, C, t_sc), lambda b, j: (b, 0, j)),
                pl.BlockSpec((1, C, 1), lambda b, j: (b, 0, 0)),
            ],
            out_specs=pl.BlockSpec((1, C, t_sc), lambda b, j: (b, 0, j)),
        ),
        compiler_params=pltpu.CompilerParams(
            dimension_semantics=("parallel", "parallel"),
            vmem_limit_bytes=int(budget)),
    )(x3, scale3)

    return out3.reshape(B, C, H, W)


# ----------------------------------------------------------------------------
# Pure-JAX reference
# ----------------------------------------------------------------------------
def channel_attention_reference(x, w1, w2):
    avg = jnp.mean(x, axis=(2, 3))                  # (B, C)
    mx = jnp.max(x, axis=(2, 3))                    # (B, C)

    def fc(v):
        h = jnp.maximum(v @ w1.T, 0.0)              # (B, hidden)
        return h @ w2.T                             # (B, C)

    s = jax.nn.sigmoid(fc(avg) + fc(mx))            # (B, C)
    return x * s[:, :, None, None]


def _make_weights(key, c, ratio):
    hidden = max(1, c // ratio)
    k1, k2 = jax.random.split(key)
    bound1 = 1.0 / math.sqrt(c)
    w1 = jax.random.uniform(k1, (hidden, c), minval=-bound1, maxval=bound1,
                            dtype=jnp.float32)
    bound2 = 1.0 / math.sqrt(hidden)
    w2 = jax.random.uniform(k2, (c, hidden), minval=-bound2, maxval=bound2,
                            dtype=jnp.float32)
    return w1, w2


if __name__ == "__main__":
    key = jax.random.PRNGKey(0)

    # ---- Test 1: default (fused single-pass) path.
    # ChannelAttention(in_planes=64, ratio=16) on NCHW (2, 64, 16, 16).
    B, C, H, W = 2, 64, 16, 16
    kx, kw, key = jax.random.split(key, 3)
    x = jax.random.normal(kx, (B, C, H, W), dtype=jnp.float32)
    w1, w2 = _make_weights(kw, C, ratio=16)

    out = jax.block_until_ready(channel_attention_forward(x, w1, w2))
    ref = channel_attention_reference(x, w1, w2)
    assert out.shape == (B, C, H, W)
    assert jnp.allclose(out, ref, atol=1e-5, rtol=1e-5), "fused path mismatch"

    # ---- Test 2: forced tiled path with a non-128-multiple HW (masked tail),
    # ChannelAttention(in_planes=16, ratio=4) on NCHW (2, 16, 12, 15).
    B2, C2, H2, W2 = 2, 16, 12, 15           # HW = 180 -> tiles of 128 + masked tail
    kx2, kw2, key = jax.random.split(key, 3)
    x2 = jax.random.normal(kx2, (B2, C2, H2, W2), dtype=jnp.float32)
    w1b, w2b = _make_weights(kw2, C2, ratio=4)

    out2 = jax.block_until_ready(
        channel_attention_forward(x2, w1b, w2b,
                                  force_path="tiled", hw_tile_override=128))
    ref2 = channel_attention_reference(x2, w1b, w2b)
    assert out2.shape == (B2, C2, H2, W2)
    assert jnp.allclose(out2, ref2, atol=2e-5, rtol=2e-5), "tiled path mismatch"

    print("KERNEL_OK")
</pallas_src>

<mosaic_0001>
module attributes {stable_mosaic.version = 11 : i64} {
  func.func @_fused_kernel(%arg0: i32, %arg1: memref<1x64x256xf32, #tpu.memory_space<vmem>>, %arg2: memref<64x4xf32, #tpu.memory_space<vmem>>, %arg3: memref<64x4xf32, #tpu.memory_space<vmem>>, %arg4: memref<1x64x256xf32, #tpu.memory_space<vmem>>) attributes {dimension_semantics = [#tpu.dimension_semantics<parallel>], iteration_bounds = array<i64: 2>, scalar_prefetch = 0 : i64, scratch_operands = 0 : i64, tpu.core_type = #tpu.core_type<tc>, window_params = [{transform_indices = @transform_0, window_bounds = array<i64: 1, 64, 256>}, {pipeline_mode = #tpu.pipeline_mode<synchronous>, transform_indices = @transform_1, window_bounds = array<i64: 64, 4>}, {pipeline_mode = #tpu.pipeline_mode<synchronous>, transform_indices = @transform_2, window_bounds = array<i64: 64, 4>}, {transform_indices = @transform_3, window_bounds = array<i64: 1, 64, 256>}]} {
    %c0 = arith.constant 0 : index
    %c0_0 = arith.constant 0 : index
    %c0_1 = arith.constant 0 : index
    %0 = vector.load %arg1[%c0, %c0_0, %c0_1] : memref<1x64x256xf32, #tpu.memory_space<vmem>>, vector<1x64x256xf32>
    %cst = arith.constant dense<0.000000e+00> : vector<1x64xf32>
    %1 = vector.multi_reduction <add>, %0, %cst [2] : vector<1x64x256xf32> to vector<1x64xf32>
    %2 = vector.shape_cast %1 : vector<1x64xf32> to vector<1x64x1xf32>
    %cst_2 = arith.constant 3.906250e-03 : f32
    %3 = vector.broadcast %cst_2 : f32 to vector<1x64x1xf32>
    %4 = arith.mulf %2, %3 : vector<1x64x1xf32>
    %cst_3 = arith.constant dense<0xFF800000> : vector<1x64xf32>
    %5 = vector.multi_reduction <maximumf>, %0, %cst_3 [2] : vector<1x64x256xf32> to vector<1x64xf32>
    %6 = vector.shape_cast %5 : vector<1x64xf32> to vector<1x64x1xf32>
    %c0_4 = arith.constant 0 : index
    %c0_5 = arith.constant 0 : index
    %7 = vector.load %arg2[%c0_4, %c0_5] : memref<64x4xf32, #tpu.memory_space<vmem>>, vector<64x4xf32>
    %c0_6 = arith.constant 0 : index
    %c0_7 = arith.constant 0 : index
    %8 = vector.load %arg3[%c0_6, %c0_7] : memref<64x4xf32, #tpu.memory_space<vmem>>, vector<64x4xf32>
    %9 = vector.shape_cast %7 : vector<64x4xf32> to vector<1x64x4xf32>
    %10 = vector.broadcast %4 : vector<1x64x1xf32> to vector<1x64x4xf32>
    %11 = arith.mulf %9, %10 : vector<1x64x4xf32>
    %cst_8 = arith.constant dense<0.000000e+00> : vector<1x4xf32>
    %12 = vector.multi_reduction <add>, %11, %cst_8 [1] : vector<1x64x4xf32> to vector<1x4xf32>
    %13 = vector.shape_cast %12 : vector<1x4xf32> to vector<1x1x4xf32>
    %cst_9 = arith.constant 0.000000e+00 : f32
    %14 = vector.broadcast %cst_9 : f32 to vector<1x1x4xf32>
    %15 = arith.maximumf %13, %14 : vector<1x1x4xf32>
    %16 = vector.shape_cast %7 : vector<64x4xf32> to vector<1x64x4xf32>
    %17 = vector.broadcast %6 : vector<1x64x1xf32> to vector<1x64x4xf32>
    %18 = arith.mulf %16, %17 : vector<1x64x4xf32>
    %cst_10 = arith.constant dense<0.000000e+00> : vector<1x4xf32>
    %19 = vector.multi_reduction <add>, %18, %cst_10 [1] : vector<1x64x4xf32> to vector<1x4xf32>
    %20 = vector.shape_cast %19 : vector<1x4xf32> to vector<1x1x4xf32>
    %cst_11 = arith.constant 0.000000e+00 : f32
    %21 = vector.broadcast %cst_11 : f32 to vector<1x1x4xf32>
    %22 = arith.maximumf %20, %21 : vector<1x1x4xf32>
    %23 = arith.addf %15, %22 : vector<1x1x4xf32>
    %24 = vector.shape_cast %8 : vector<64x4xf32> to vector<1x64x4xf32>
    %25 = vector.broadcast %23 : vector<1x1x4xf32> to vector<1x64x4xf32>
    %26 = arith.mulf %24, %25 : vector<1x64x4xf32>
    %cst_12 = arith.constant dense<0.000000e+00> : vector<1x64xf32>
    %27 = vector.multi_reduction <add>, %26, %cst_12 [2] : vector<1x64x4xf32> to vector<1x64xf32>
    %28 = vector.shape_cast %27 : vector<1x64xf32> to vector<1x64x1xf32>
    %29 = arith.negf %28 : vector<1x64x1xf32>
    %30 = math.exp %29 : vector<1x64x1xf32>
    %cst_13 = arith.constant 1.000000e+00 : f32
    %31 = vector.broadcast %cst_13 : f32 to vector<1x64x1xf32>
    %32 = arith.addf %31, %30 : vector<1x64x1xf32>
    %33 = arith.divf %31, %32 : vector<1x64x1xf32>
    %34 = vector.broadcast %33 : vector<1x64x1xf32> to vector<1x64x256xf32>
    %35 = arith.mulf %0, %34 : vector<1x64x256xf32>
    %c0_14 = arith.constant 0 : index
    %c0_15 = arith.constant 0 : index
    %c0_16 = arith.constant 0 : index
    %36 = vector.load %arg4[%c0_14, %c0_15, %c0_16] : memref<1x64x256xf32, #tpu.memory_space<vmem>>, vector<1x64x256xf32>
    tpu.vector_store %arg4[%c0_14, %c0_15, %c0_16], %35 {strides = array<i32>} : memref<1x64x256xf32, #tpu.memory_space<vmem>>, vector<1x64x256xf32>,
    return
  }
  func.func @transform_0(%arg0: i32) -> (i32, i32, i32) {
    %c0_i32 = arith.constant 0 : i32
    %c0_i32_0 = arith.constant 0 : i32
    %c0_i32_1 = arith.constant 0 : i32
    return %arg0, %c0_i32, %c0_i32_0 : i32, i32, i32
  }
  func.func @transform_1(%arg0: i32) -> (i32, i32) {
    %c0_i32 = arith.constant 0 : i32
    %c0_i32_0 = arith.constant 0 : i32
    %c0_i32_1 = arith.constant 0 : i32
    return %c0_i32, %c0_i32_0 : i32, i32
  }
  func.func @transform_2(%arg0: i32) -> (i32, i32) {
    %c0_i32 = arith.constant 0 : i32
    %c0_i32_0 = arith.constant 0 : i32
    %c0_i32_1 = arith.constant 0 : i32
    return %c0_i32, %c0_i32_0 : i32, i32
  }
  func.func @transform_3(%arg0: i32) -> (i32, i32, i32) {
    %c0_i32 = arith.constant 0 : i32
    %c0_i32_0 = arith.constant 0 : i32
    %c0_i32_1 = arith.constant 0 : i32
    return %arg0, %c0_i32, %c0_i32_0 : i32, i32, i32
  }
}

</mosaic_0001>

<bundles_post_ra>
// kernel: tpu_custom_call.1
= control target key start
LH: loop header
LB: loop body
LE: loop exit
PB: predicated region body
PF: predicated region fallthrough
CT: control target
= control target key end

     0   :  { %8 = vsyncpa [#allocation3], 0  ;;  %s1123_s0 = inlined_call_operand.hbm [shape: f32[2,64,256], index: 0, kind: input, shape index: {}]   ;;  %s1124_s1 = inlined_call_operand.vmem [shape: f32[64,4], index: 1, kind: input, shape index: {}]   ;;  %s1125_s2 = inlined_call_operand.vmem [shape: f32[64,4], index: 2, kind: input, shape index: {}]   ;;  %s1126_s3 = inlined_call_operand.hbm [shape: f32[2,64,256], index: 3, kind: output, shape index: {}]  }
   0x1   :  { %10 = vsyncpa [#allocation3 + $0x1], 0 }
   0x2   :  { %11 = vsyncpa [#allocation4], 0 }
   0x3   :  { %13 = vsyncpa [#allocation4 + $0x1], 0  ;;  %s768_s12 = smov 0   ;;  %s770_s13 = smov 0  }
   0x4   :  { %s772_s14 = smov 0   ;;  %s774_s15 = smov 0  }
   0x5 LB: > { %s789_s16 = sadd.s32 4294967295, %s740_s15   ;;  %s538_s17 = sadd.s32 4294967294, %s740_s15   ;;  %s740_s15 = sphi %s774_s15, %s1139_s15   ;;  %s736_s14 = sphi %s772_s14, %s1138_s14   ;;  %s732_s13 = sphi %s770_s13, %s1137_s13   ;;  %s728_s12 = sphi %s768_s12, %s1136_s12  }
   0x6   : > { %s793_s18 = sadd.s32 1, %s740_s15   ;;  %s26_s19 = sadd.s32 1, %s736_s14 }
   0x7   : > { %s23_s20 = ssub.s32 %s740_s15, %s793_s18  ;;  %p33_p0 = scmp.ne.s32.totalorder %s736_s14, %s732_s13 }
   0x8   : > { %p24_p1 = scmp.eq.s32.totalorder %s23_s20, 0  ;;  %p34_p2 = scmp.eq.s32.totalorder %s740_s15, 0 }
   0x9   : > { %p39_p3 = scmp.ne.s32.totalorder %s732_s13, %s728_s12  ;;  %p40_p4 = scmp.eq.s32.totalorder %s789_s16, 0 }
   0xa   : > { %s805_s21 = scalar_select %p24_p1, %s736_s14, %s26_s19  }
   0xb   : > { %p807_p5 = por %p34_p2, %p33_p0  ;;  %p811_p6 = por %p40_p4, %p39_p3 }
   0xc   : > { %p105_p7 = scmp.eq.s32.totalorder %s789_s16, 1  ;;  %p111_p8 = scmp.eq.s32.totalorder %s538_s17, 1 }
   0xd   : > { %p574_p10 = scmp.lt.s32.totalorder %s740_s15, 2  ;;  %s137_s26 = sand.u32 1, %s736_s14  }
   0xe   : > { %p818_p11 = por %p105_p7, %p33_p0  ;;  %p822_p12 = por %p111_p8, %p39_p3 }
   0xf   : > { %s560_s27 = sshll.u32 %s740_s15, 11  ;;  %s541_s28 = sshll.u32 %s137_s26, 7 }
  0x10   : > { %s1130_s24 = scalar_select %p818_p11, 1, 0 }
  0x11   : > { %s1131_s25 = scalar_select %p822_p12, 1, 0 }
  0x12   : > { %s831_s4 = scalar_lea.hbm %s1123_s0, %s560_s27  ;;  %s141_s5 = scalar_lea.vmem [#allocation2], %s541_s28 }
  0x13   : > { %s148_s6 = sshll.u32 %s141_s5, 4  ;;  %p835_p13 = pnand %p574_p10, %p807_p5  ;;  %s839_s6 = int_to_ptr.vmem [resolvable:$true] %s148_s6 }
  0x14   : > { %s841_s8 = scalar_lea.sflag [#allocation3], %s137_s26  ;;  %s644_s9 = scalar_lea.hbm %s831_s4, 2048 }
  0x15   : > { %p645_p0 = scmp.ne.s32.totalorder %s831_s4, %s644_s9  ;;  %p646_p1 = pneg %p835_p13 }
  0x16   : > { %s649_s17 = scalar_lea.hbm %s1123_s0, 4096  ;;  %p650_p4 = scmp.lt.u32.totalorder %s831_s4, %s1123_s0 }
  0x17   : > { %p647_p2 = pnand %p646_p1, %p645_p0  ;;  %p651_p5 = scmp.lt.u32.totalorder %s649_s17, %s644_s9 }
  0x18   : > { %p653_p8 = scmp.lt.u32.totalorder %s644_s9, %s831_s4 }
  0x19   : > { %p648_p3 = pneg %p647_p2  ;;  %p652_p7 = por %p651_p5, %p650_p4 }
  0x1b   : > { %p654_p10 = por %p653_p8, %p652_p7 }
  0x1d   : > { %p655_p9 = pnand %p654_p10, %p648_p3 }
  0x1f   : > { %658 = shalt.err (!%p655_p9)
}
  0x20   : > { %s659_s22 = scalar_lea.vmem %s839_s6, 2048  ;;  %s742_s26 = smov [#allocation2]  }
  0x21   : > { %p660_p0 = scmp.ne.s32.totalorder %s839_s6, %s659_s22  ;;  %s664_s27 = sshll.u32 %s742_s26, 4  ;;  %s665_s27 = int_to_ptr.vmem [resolvable:$false] %s664_s27 }
  0x22   : > { %s666_s28 = scalar_lea.vmem %s665_s27, 4096  ;;  %p667_p11 = scmp.lt.s32.totalorder %s839_s6, %s665_s27 }
  0x23   : > { %p662_p2 = pnand %p660_p0, %p646_p1  ;;  %p668_p4 = scmp.lt.s32.totalorder %s666_s28, %s659_s22 }
  0x25   : > { %p663_p12 = pneg %p662_p2  ;;  %p669_p5 = por %p668_p4, %p667_p11 }
  0x27   : > { %p670_p7 = pnand %p669_p5, %p663_p12 }
  0x29   : > { %673 = shalt.err (!%p670_p7)
}
  0x2a   : > { %s743_s29 = smov 256   ;;  %s744_s30 = smov 16  }
  0x2b   : > { %569 = dma.hbm_to_vmem [thread:$0]  (!%p835_p13), %s831_s4, 2048, %s839_s6, %s841_s8, %s743_s29, %s743_s29, %s744_s30  }
  0x2c   : > { %p544_p9 = scmp.ge.s32.totalorder %s740_s15, 1  ;;  %p156_p1 = scmp.lt.s32.totalorder %s740_s15, 3 }
  0x2e   : > { %p157_p3 = pnand %p544_p9, %p156_p1 }
  0x2f   : > { %s872_s5 = sand.u32 (!%p157_p3), 1, %s732_s13  }
  0x30   : > { %160 = sbr.rel (%p157_p3) target bundleno = 456 (0x1c8), region = 32  ;;  %s545_s9 = sshll.u32 (!%p157_p3), %s872_s5, 7 }
  0x31   : > { %s163_s10 = scalar_lea.sflag (!%p157_p3), [#allocation3], %s872_s5  ;;  %s878_s11 = scalar_lea.vmem (!%p157_p3), [#allocation2], %s545_s9 }
  0x37   : > { %719 = dma.done.wait (%p811_p6), %s163_s10, 2048  }
  0x38   : > { %721 = vsyncadd (%p811_p6), %s163_s10, 4294965248  ;;  %v885_v0 = vld [vmem:[%s878_s11 + $0x20] sm:$0xff]  ;;  %v888_v1 = vld [vmem:[%s878_s11 + $0x28] sm:$0xff]  ;;  %vm285_vm0 = vcmask 31744   ;;  %s1042_s23 = scalar_lea.vmem [#allocation5], %s545_s9  ;;  %s561_s9 = sshll.u32 %s789_s16, 11 }
  0x39   : > { %v891_v2 = vld [vmem:[%s878_s11] sm:$0xff]  ;;  %v211_v3 = vadd.f32 %v888_v1, %v885_v0  ;;  %v896_v4 = vld [vmem:[%s878_s11 + $0x8] sm:$0xff]  ;;  %v899_v5 = vld [vmem:[%s878_s11 + $0x10] sm:$0xff]  ;;  %v243_v17 = vmax.f32 %v885_v0, %v888_v1  ;;  %s465_s4 = sshll.u32 %s1042_s23, 4  ;;  %s1073_s8 = scalar_lea.hbm %s1126_s3, %s561_s9  ;;  %s1075_s4 = int_to_ptr.vmem [resolvable:$true] %s465_s4 }
  0x3a   : > { %v902_v6 = vld [vmem:[%s878_s11 + $0x18] sm:$0xff]  ;;  %v205_v7 = vadd.f32 %v896_v4, %v891_v2  ;;  %v237_v8 = vmax.f32 %v891_v2, %v896_v4  ;;  %v911_v10 = vld [vmem:[%s878_s11 + $0x30] sm:$0xff]  ;;  %v921_v14 = vld [vmem:[%s878_s11 + $0x40] sm:$0xff]  ;;  %s452_s16 = scalar_lea.sflag [#allocation4], %s872_s5  ;;  %s674_s17 = scalar_lea.vmem %s1075_s4, 2048 }
  0x3b   : > { %212 = vadd.xlane.f32.xlu1 %v211_v3  ;;  %v208_v9 = vadd.f32 %v902_v6, %v899_v5  ;;  %v914_v11 = vld [vmem:[%s878_s11 + $0x38] sm:$0xff]  ;;  %v240_v13 = vmax.f32 %v899_v5, %v902_v6  ;;  %v924_v15 = vld [vmem:[%s878_s11 + $0x48] sm:$0xff]  ;;  %v931_v18 = vld [vmem:[%s878_s11 + $0x50] sm:$0xff]  ;;  %p675_p6 = scmp.ne.s32.totalorder %s1075_s4, %s674_s17  ;;  %p1133_p11 = scmp.ne.s32.totalorder %s1130_s24, 0 }
  0x3c   : > { %206 = vadd.xlane.f32.xlu0 %v205_v7  ;;  %v214_v12 = vadd.f32 %v914_v11, %v911_v10  ;;  %v217_v16 = vadd.f32 %v924_v15, %v921_v14  ;;  %v934_v19 = vld [vmem:[%s878_s11 + $0x58] sm:$0xff]  ;;  %v246_v21 = vmax.f32 %v911_v10, %v914_v11  ;;  %v941_v22 = vld [vmem:[%s878_s11 + $0x60] sm:$0xff]  ;;  %v944_v23 = vld [vmem:[%s878_s11 + $0x68] sm:$0xff]  ;;  %v249_v25 = vmax.f32 %v921_v14, %v924_v15  ;;  %s745_s19 = smov [#allocation5]  }
  0x3d   : > { %v220_v20 = vadd.f32 %v934_v19, %v931_v18  ;;  %v223_v24 = vadd.f32 %v944_v23, %v941_v22  ;;  %v951_v26 = vld [vmem:[%s878_s11 + $0x70] sm:$0xff]  ;;  %v954_v27 = vld [vmem:[%s878_s11 + $0x78] sm:$0xff]  ;;  %v252_v29 = vmax.f32 %v931_v18, %v934_v19  ;;  %v255_v31 = vmax.f32 %v941_v22, %v944_v23  ;;  %v262_v37 = vld [vmem:[%s1124_s1 + $0x8] sm:$0xff]  ;;  %p676_p12 = pnand %p675_p6, %p1133_p11  ;;  %s678_s20 = sshll.u32 %s745_s19, 4  ;;  %s679_s20 = int_to_ptr.vmem [resolvable:$false] %s678_s20 }
  0x3e   : > { %v226_v28 = vadd.f32 %v954_v27, %v951_v26  ;;  %v258_v30 = vmax.f32 %v951_v26, %v954_v27  ;;  %v261_v38 = vld [vmem:[%s1124_s1] sm:$0xff]  ;;  %v263_v45 = vld [vmem:[%s1124_s1 + $0x10] sm:$0xff]  ;;  %v264_v49 = vld [vmem:[%s1124_s1 + $0x18] sm:$0xff]  ;;  %s680_s22 = scalar_lea.vmem %s679_s20, 4096  ;;  %p681_p8 = scmp.lt.s32.totalorder %s1075_s4, %s679_s20 }
  0x3f   : > { %238 = vmax.xlane.f32.xlu1 %v237_v8  ;;  %v265_v55 = vld [vmem:[%s1124_s1 + $0x20] sm:$0xff]  ;;  %v266_v59 = vld [vmem:[%s1124_s1 + $0x28] sm:$0xff]  ;;  %p677_p13 = pneg %p676_p12  ;;  %p682_p10 = scmp.lt.s32.totalorder %s680_s22, %s674_s17 }
  0x40   : > { %209 = vadd.xlane.f32.xlu0 %v208_v9 }
  0x41   : > { %p683_p0 = por %p682_p10, %p681_p8 }
  0x43   : > { %215 = vadd.xlane.f32.xlu1 %v214_v12  ;;  %p684_p2 = pnand %p683_p0, %p677_p13 }
  0x44   : > { %241 = vmax.xlane.f32.xlu0 %v240_v13 }
  0x47   : > { %218 = vadd.xlane.f32.xlu1 %v217_v16 }
  0x48   : > { %244 = vmax.xlane.f32.xlu0 %v243_v17 }
  0x4b   : > { %221 = vadd.xlane.f32.xlu1 %v220_v20  ;;  %v267_v20 = vld [vmem:[%s1124_s1 + $0x30] sm:$0xff] }
  0x4c   : > { %247 = vmax.xlane.f32.xlu0 %v246_v21 }
  0x4f   : > { %224 = vadd.xlane.f32.xlu1 %v223_v24 }
  0x50   : > { %250 = vmax.xlane.f32.xlu0 %v249_v25 }
  0x53   : > { %227 = vadd.xlane.f32.xlu1 %v226_v28 }
  0x54   : > { %253 = vmax.xlane.f32.xlu0 %v252_v29 }
  0x57   : > { %259 = vmax.xlane.f32.xlu1 %v258_v30 }
  0x58   : > { %256 = vmax.xlane.f32.xlu0 %v255_v31 }
  0xc8   : > { %v213_v32 = vpop.xlane.xlu1 %212 }
  0xc9   : > { %v207_v33 = vpop.xlane.xlu0 %206  ;;  %v231_v42 = vmul.f32 0.00390625, %v213_v32 }
  0xca   : > { %v229_v35 = vmul.f32 0.00390625, %v207_v33 }
  0xcb   : > { %v279_v52 = vmul.f32 %v263_v45, %v231_v42 }
  0xcc   : > { %v239_v34 = vpop.xlane.xlu1 %238  ;;  %v277_v43 = vmul.f32 %v261_v38, %v229_v35 }
  0xcd   : > { %v210_v36 = vpop.xlane.xlu0 %209  ;;  %v289_v60 = vsel %vm285_vm0, %v279_v52, 0.0  ;;  %v308_v3 = vmul.f32 %v261_v38, %v239_v34  ;;  %v268_v38 = vld [vmem:[%s1124_s1 + $0x38] sm:$0xff] }
  0xce   : > { %v230_v39 = vmul.f32 0.00390625, %v210_v36  ;;  %v286_v50 = vsel %vm285_vm0, %v277_v43, 0.0 }
  0xcf   : > { %v316_v28 = vsel %vm285_vm0, %v308_v3, 0.0 }
  0xd0   : > { %v216_v40 = vpop.xlane.xlu1 %215  ;;  %v278_v41 = vmul.f32 %v262_v37, %v230_v39 }
  0xd1   : > { %v242_v44 = vpop.xlane.xlu0 %241  ;;  %v232_v46 = vmul.f32 0.00390625, %v216_v40 }
  0xd2   : > { %v287_v47 = vsel %vm285_vm0, %v278_v41, 0.0  ;;  %v309_v57 = vmul.f32 %v262_v37, %v242_v44 }
  0xd3   : > { %v288_v54 = vadd.f32 %v287_v47, %v286_v50  ;;  %v280_v56 = vmul.f32 %v264_v49, %v232_v46 }
  0xd4   : > { %v219_v48 = vpop.xlane.xlu1 %218  ;;  %v317_v13 = vsel %vm285_vm0, %v309_v57, 0.0 }
  0xd5   : > { %v233_v51 = vmul.f32 0.00390625, %v219_v48  ;;  %v245_v53 = vpop.xlane.xlu0 %244  ;;  %v290_v7 = vadd.f32 %v289_v60, %v288_v54  ;;  %v291_v9 = vsel %vm285_vm0, %v280_v56, 0.0  ;;  %v318_v32 = vadd.f32 %v317_v13, %v316_v28  ;;  %v270_v28 = vld [vmem:[%s1125_s2 + $0x8] sm:$0xff] }
  0xd6   : > { %v310_v8 = vmul.f32 %v263_v45, %v245_v53 }
  0xd7   : > { %v281_v63 = vmul.f32 %v265_v55, %v233_v51  ;;  %v292_v30 = vadd.f32 %v291_v9, %v290_v7 }
  0xd8   : > { %v222_v58 = vpop.xlane.xlu1 %221  ;;  %v319_v29 = vsel %vm285_vm0, %v310_v8, 0.0 }
  0xd9   : > { %v234_v61 = vmul.f32 0.00390625, %v222_v58  ;;  %v248_v62 = vpop.xlane.xlu0 %247  ;;  %v293_v24 = vsel %vm285_vm0, %v281_v63, 0.0  ;;  %v320_v39 = vadd.f32 %v319_v29, %v318_v32  ;;  %v269_v29 = vld [vmem:[%s1125_s2] sm:$0xff]  ;;  %v271_v32 = vld [vmem:[%s1125_s2 + $0x10] sm:$0xff] }
  0xda   : > { %v311_v16 = vmul.f32 %v264_v49, %v248_v62  ;;  %v294_v36 = vadd.f32 %v293_v24, %v292_v30 }
  0xdb   : > { %v282_v12 = vmul.f32 %v266_v59, %v234_v61 }
  0xdc   : > { %v225_v17 = vpop.xlane.xlu1 %224  ;;  %v321_v35 = vsel %vm285_vm0, %v311_v16, 0.0 }
  0xdd   : > { %v235_v21 = vmul.f32 0.00390625, %v225_v17  ;;  %v251_v25 = vpop.xlane.xlu0 %250  ;;  %v295_v33 = vsel %vm285_vm0, %v282_v12, 0.0  ;;  %v322_v46 = vadd.f32 %v321_v35, %v320_v39  ;;  %v274_v39 = vld [vmem:[%s1125_s2 + $0x28] sm:$0xff] }
  0xde   : > { %v312_v31 = vmul.f32 %v265_v55, %v251_v25  ;;  %v296_v44 = vadd.f32 %v295_v33, %v294_v36 }
  0xdf   : > { %v283_v34 = vmul.f32 %v267_v20, %v235_v21 }
  0xe0   : > { %v228_v37 = vpop.xlane.xlu1 %227  ;;  %v323_v43 = vsel %vm285_vm0, %v312_v31, 0.0  ;;  %v272_v31 = vld [vmem:[%s1125_s2 + $0x18] sm:$0xff] }
  0xe1   : > { %v236_v40 = vmul.f32 0.00390625, %v228_v37  ;;  %v254_v41 = vpop.xlane.xlu0 %253  ;;  %v297_v42 = vsel %vm285_vm0, %v283_v34, 0.0  ;;  %v324_v51 = vadd.f32 %v323_v43, %v322_v46  ;;  %v275_v46 = vld [vmem:[%s1125_s2 + $0x30] sm:$0xff] }
  0xe2   : > { %v313_v45 = vmul.f32 %v266_v59, %v254_v41  ;;  %v298_v49 = vadd.f32 %v297_v42, %v296_v44 }
  0xe3   : > { %v284_v47 = vmul.f32 %v268_v38, %v236_v40  ;;  %v273_v40 = vld [vmem:[%s1125_s2 + $0x20] sm:$0xff] }
  0xe4   : > { %v325_v48 = vsel %vm285_vm0, %v313_v45, 0.0  ;;  %v260_v50 = vpop.xlane.xlu1 %259  ;;  %v276_v45 = vld [vmem:[%s1125_s2 + $0x38] sm:$0xff] }
  0xe5   : > { %v257_v52 = vpop.xlane.xlu0 %256  ;;  %v299_v53 = vsel %vm285_vm0, %v284_v47, 0.0  ;;  %v315_v54 = vmul.f32 %v268_v38, %v260_v50  ;;  %v326_v57 = vadd.f32 %v325_v48, %v324_v51 }
  0xe6   : > { %v314_v55 = vmul.f32 %v267_v20, %v257_v52  ;;  %v300_v56 = vadd.f32 %v299_v53, %v298_v49 }
  0xe7   : > { %v329_v61 = vsel %vm285_vm0, %v315_v54, 0.0 }
  0xe8   : > { %v327_v58 = vsel %vm285_vm0, %v314_v55, 0.0  ;;  %v301_v60 = vrot.slane %v300_v56, 4 }
  0xe9   : > { %v328_v59 = vadd.f32 %v327_v58, %v326_v57 }
  0xea   : > { %v302_v62 = vadd.f32 %v301_v60, %v300_v56 }
  0xeb   : > { %v330_v63 = vadd.f32 %v329_v61, %v328_v59 }
  0xec   : > { %v303_v3 = vrot.slane %v302_v62, 2 }
  0xed   : > { %v331_v7 = vrot.slane %v330_v63, 4 }
  0xee   : > { %v304_v8 = vadd.f32 %v303_v3, %v302_v62 }
  0xef   : > { %v332_v9 = vadd.f32 %v331_v7, %v330_v63 }
  0xf0   : > { %v305_v12 = vrot.slane %v304_v8, 1 }
  0xf1   : > { %v333_v13 = vrot.slane %v332_v9, 2 }
  0xf2   : > { %v306_v17 = vadd.f32 %v305_v12, %v304_v8 }
  0xf3   : > { %v334_v16 = vadd.f32 %v333_v13, %v332_v9 }
  0xf4   : > { %v307_v24 = vmax.f32 %v306_v17, 0.0 }
  0xf5   : > { %v335_v21 = vrot.slane %v334_v16, 1 }
  0xf7   : > { %v336_v20 = vadd.f32 %v335_v21, %v334_v16 }
  0xf9   : > { %v337_v25 = vmax.f32 %v336_v20, 0.0 }
  0xfb   : > { %v338_v30 = vadd.f32 %v337_v25, %v307_v24 }
  0xfd   : > { %v340_v33 = vmul.f32 %v338_v30, %v270_v28  ;;  %v339_v34 = vmul.f32 %v338_v30, %v269_v29  ;;  %v342_v37 = vmul.f32 %v338_v30, %v272_v31  ;;  %v341_v38 = vmul.f32 %v338_v30, %v271_v32 }
  0xfe   : > { %v344_v43 = vmul.f32 %v338_v30, %v274_v39  ;;  %v343_v44 = vmul.f32 %v338_v30, %v273_v40  ;;  %v346_v49 = vmul.f32 %v338_v30, %v276_v45  ;;  %v345_v50 = vmul.f32 %v338_v30, %v275_v46 }
  0xff   : > { %v350_v35 = vsel %vm285_vm0, %v340_v33, 0.0  ;;  %v347_v36 = vsel %vm285_vm0, %v339_v34, 0.0  ;;  %v356_v41 = vsel %vm285_vm0, %v342_v37, 0.0  ;;  %v353_v42 = vsel %vm285_vm0, %v341_v38, 0.0 }
 0x100   : > { %351 = vadd.xlane.f32.xlu1 %v350_v35  ;;  %348 = vadd.xlane.f32.xlu0 %v347_v36  ;;  %v362_v47 = vsel %vm285_vm0, %v344_v43, 0.0  ;;  %v359_v48 = vsel %vm285_vm0, %v343_v44, 0.0  ;;  %v368_v51 = vsel %vm285_vm0, %v346_v49, 0.0  ;;  %v365_v52 = vsel %vm285_vm0, %v345_v50, 0.0 }
 0x104   : > { %357 = vadd.xlane.f32.xlu1 %v356_v41  ;;  %354 = vadd.xlane.f32.xlu0 %v353_v42 }
 0x108   : > { %363 = vadd.xlane.f32.xlu1 %v362_v47  ;;  %360 = vadd.xlane.f32.xlu0 %v359_v48 }
 0x10c   : > { %369 = vadd.xlane.f32.xlu1 %v368_v51  ;;  %366 = vadd.xlane.f32.xlu0 %v365_v52 }
 0x18d   : > { %v352_v53 = vpop.xlane.xlu1 %351  ;;  %v349_v54 = vpop.xlane.xlu0 %348 }
 0x18e   : > { %v548_v55 = vmul.f32 -1.442695, %v352_v53  ;;  %v547_v56 = vmul.f32 -1.442695, %v349_v54 }
 0x190   : > { %612 = vpow2.f32 %v548_v55 }
 0x191   : > { %614 = vpow2.f32 %v547_v56  ;;  %v358_v57 = vpop.xlane.xlu1 %357  ;;  %v355_v58 = vpop.xlane.xlu0 %354 }
 0x192   : > { %v550_v60 = vmul.f32 -1.442695, %v358_v57  ;;  %v549_v61 = vmul.f32 -1.442695, %v355_v58 }
 0x194   : > { %616 = vpow2.f32 %v550_v60 }
 0x195   : > { %618 = vpow2.f32 %v549_v61  ;;  %v364_v59 = vpop.xlane.xlu1 %363  ;;  %v361_v62 = vpop.xlane.xlu0 %360 }
 0x196   : > { %v552_v63 = vmul.f32 -1.442695, %v364_v59  ;;  %v551_v3 = vmul.f32 -1.442695, %v361_v62 }
 0x198   : > { %620 = vpow2.f32 %v552_v63 }
 0x199   : > { %622 = vpow2.f32 %v551_v3  ;;  %v370_v7 = vpop.xlane.xlu1 %369  ;;  %v367_v8 = vpop.xlane.xlu0 %366 }
 0x19a   : > { %v613_v9 = vpop.eup %612  ;;  %v554_v12 = vmul.f32 -1.442695, %v370_v7  ;;  %v553_v17 = vmul.f32 -1.442695, %v367_v8 }
 0x19b   : > { %v615_v13 = vpop.eup %614  ;;  %v396_v16 = vadd.f32 1.0, %v613_v9 }
 0x19c   : > { %v395_v21 = vadd.f32 1.0, %v615_v13  ;;  %624 = vpow2.f32 %v554_v12 }
 0x19d   : > { %626 = vrcp.f32 %v396_v16 }
 0x19e   : > { %v617_v20 = vpop.eup %616  ;;  %628 = vrcp.f32 %v395_v21 }
 0x19f   : > { %v619_v24 = vpop.eup %618  ;;  %v398_v25 = vadd.f32 1.0, %v617_v20  ;;  %630 = vpow2.f32 %v553_v17 }
 0x1a0   : > { %v397_v28 = vadd.f32 1.0, %v619_v24 }
 0x1a1   : > { %632 = vrcp.f32 %v398_v25 }
 0x1a2   : > { %v621_v29 = vpop.eup %620  ;;  %634 = vrcp.f32 %v397_v28 }
 0x1a3   : > { %v623_v30 = vpop.eup %622  ;;  %v400_v31 = vadd.f32 1.0, %v621_v29 }
 0x1a4   : > { %v399_v32 = vadd.f32 1.0, %v623_v30 }
 0x1a5   : > { %636 = vrcp.f32 %v400_v31 }
 0x1a6   : > { %v625_v33 = vpop.eup %624  ;;  %638 = vrcp.f32 %v399_v32 }
 0x1a7   : > { %v627_v34 = vpop.eup %626  ;;  %v402_v35 = vadd.f32 1.0, %v625_v33 }
 0x1a8   : > { %v629_v36 = vpop.eup %628  ;;  %v421_v37 = vmul.f32 %v627_v34, %v899_v5  ;;  %v422_v38 = vmul.f32 %v627_v34, %v902_v6 }
 0x1a9   : > { %v631_v39 = vpop.eup %630  ;;  %v419_v40 = vmul.f32 %v629_v36, %v891_v2  ;;  %v420_v41 = vmul.f32 %v629_v36, %v896_v4  ;;  %640 = vrcp.f32 %v402_v35 }
 0x1aa   : > { %437 = vst [vmem:[%s1042_s23 + $0x10] sm:$0xff] %v421_v37  ;;  %438 = vst [vmem:[%s1042_s23 + $0x18] sm:$0xff] %v422_v38  ;;  %v401_v5 = vadd.f32 1.0, %v631_v39 }
 0x1ab   : > { %v633_v6 = vpop.eup %632  ;;  %435 = vst [vmem:[%s1042_s23] sm:$0xff] %v419_v40  ;;  %436 = vst [vmem:[%s1042_s23 + $0x8] sm:$0xff] %v420_v41 }
 0x1ac   : > { %v635_v2 = vpop.eup %634  ;;  %v425_v4 = vmul.f32 %v633_v6, %v911_v10  ;;  %v426_v42 = vmul.f32 %v633_v6, %v914_v11  ;;  %642 = vrcp.f32 %v401_v5 }
 0x1ad   : > { %v423_v43 = vmul.f32 %v635_v2, %v885_v0  ;;  %v424_v44 = vmul.f32 %v635_v2, %v888_v1 }
 0x1ae   : > { %441 = vst [vmem:[%s1042_s23 + $0x30] sm:$0xff] %v425_v4  ;;  %442 = vst [vmem:[%s1042_s23 + $0x38] sm:$0xff] %v426_v42 }
 0x1af   : > { %v637_v45 = vpop.eup %636  ;;  %439 = vst [vmem:[%s1042_s23 + $0x20] sm:$0xff] %v423_v43  ;;  %440 = vst [vmem:[%s1042_s23 + $0x28] sm:$0xff] %v424_v44 }
 0x1b0   : > { %v639_v46 = vpop.eup %638  ;;  %v429_v10 = vmul.f32 %v637_v45, %v931_v18  ;;  %v430_v11 = vmul.f32 %v637_v45, %v934_v19 }
 0x1b1   : > { %v427_v47 = vmul.f32 %v639_v46, %v921_v14  ;;  %v428_v0 = vmul.f32 %v639_v46, %v924_v15 }
 0x1b2   : > { %445 = vst [vmem:[%s1042_s23 + $0x50] sm:$0xff] %v429_v10  ;;  %446 = vst [vmem:[%s1042_s23 + $0x58] sm:$0xff] %v430_v11 }
 0x1b3   : > { %v641_v1 = vpop.eup %640  ;;  %443 = vst [vmem:[%s1042_s23 + $0x40] sm:$0xff] %v427_v47  ;;  %444 = vst [vmem:[%s1042_s23 + $0x48] sm:$0xff] %v428_v0 }
 0x1b4   : > { %v433_v48 = vmul.f32 %v641_v1, %v951_v26  ;;  %v434_v18 = vmul.f32 %v641_v1, %v954_v27 }
 0x1b6   : > { %v643_v19 = vpop.eup %642  ;;  %449 = vst [vmem:[%s1042_s23 + $0x70] sm:$0xff] %v433_v48  ;;  %450 = vst [vmem:[%s1042_s23 + $0x78] sm:$0xff] %v434_v18 }
 0x1b7   : > { %v431_v14 = vmul.f32 %v643_v19, %v941_v22  ;;  %v432_v15 = vmul.f32 %v643_v19, %v944_v23 }
 0x1b9   : > { %447 = vst [vmem:[%s1042_s23 + $0x60] sm:$0xff] %v431_v14  ;;  %448 = vst [vmem:[%s1042_s23 + $0x68] sm:$0xff] %v432_v15 }
 0x1ba   : > { %687 = shalt.err (!%p684_p2)
}
 0x1bb   : > { %s688_s26 = scalar_lea.hbm %s1073_s8, 2048  ;;  %s692_s29 = scalar_lea.hbm %s1126_s3, 4096 }
 0x1bc   : > { %p689_p4 = scmp.ne.s32.totalorder %s1073_s8, %s688_s26  ;;  %p693_p9 = scmp.lt.u32.totalorder %s1073_s8, %s1126_s3 }
 0x1bd   : > { %p694_p1 = scmp.lt.u32.totalorder %s692_s29, %s688_s26  ;;  %p696_p6 = scmp.lt.u32.totalorder %s688_s26, %s1073_s8 }
 0x1be   : > { %p690_p5 = pnand %p689_p4, %p1133_p11 }
 0x1bf   : > { %p695_p3 = por %p694_p1, %p693_p9 }
 0x1c0   : > { %p691_p7 = pneg %p690_p5 }
 0x1c1   : > { %p697_p12 = por %p696_p6, %p695_p3 }
 0x1c3   : > { %p698_p13 = pnand %p697_p12, %p691_p7 }
 0x1c5   : > { %701 = shalt.err (!%p698_p13)
}
 0x1c6   : > { %s746_s11 = smov 256   ;;  %s747_s23 = smov 16  }
 0x1c7   : > { %564 = dma.vmem_to_hbm [thread:$0]  (%p1133_p11), %s1075_s4, 2048, %s1073_s8, %s452_s16, %s746_s11, %s746_s11, %s747_s23  }
 0x1c8 PF: > { %s480_s9 = sand.u32 1, %s728_s12   ;;  %p1134_p8 = scmp.ne.s32.totalorder %s1131_s25, 0 }
 0x1c9   : > { %p1135_p10 = scmp.ge.s32.totalorder %s740_s15, 2  ;;  %s481_s6 = scalar_lea.sflag [#allocation4], %s480_s9 }
 0x1cb   : > { %p571_p0 = pnand %p1135_p10, %p1134_p8 }
 0x1cd   : > { %723 = dma.done.wait (!%p571_p0), %s481_s6, 2048  }
 0x1ce   : > { %725 = vsyncadd (!%p571_p0), %s481_s6, 4294965248  ;;  %p16_p2 = scmp.ge.s32.totalorder %s793_s18, 4   ;;  %s1136_s12 = smov %s732_s13 }
 0x1cf   : > { %s1137_s13 = smov %s736_s14  ;;  %s1138_s14 = smov %s805_s21 }
 0x1d0   : > { %s1139_s15 = smov %s793_s18  ;;  %18 = sbr.rel (!%p16_p2) target bundleno = 5 (0x5), region = 77 }
 0x1d7   :  { %486 = vsyncpa [#allocation3], 1 }
 0x1d8   :  { %488 = vsyncpa [#allocation3 + $0x1], 1 }
 0x1d9   :  { %489 = vsyncpa [#allocation4], 1 }
 0x1da   :  { %491 = vsyncpa [#allocation4 + $0x1], 1 }

</bundles_post_ra>
